<compile_context>
chip_gen: v6e
topology: v6e:2x2x1
jax: 0.10.0
libtpu: 0.0.40
codegen_flags: <defaults>
</compile_context>

<pallas_src>
from functools import partial

import numpy as np
import jax
import jax.numpy as jnp
from jax import lax
from jax.experimental import pallas as pl
from jax.experimental.pallas import tpu as pltpu

EPS = 1e-5  # nn.BatchNorm1d default


def _conv_tile(xt_ref, wc_ref, wp_ref, wn_ref):
    """Fused transposed-conv for one (TL, C) row tile -> (TL, 4C) f32, phases packed in lanes.

    xt_ref: (1, 1, TL+2, C) bf16  -- rows [halo_prev, x[0..TL-1], halo_next]
    wc_ref: (C, 4C) bf16          -- taps 1..4 (phase p columns [p*C, (p+1)*C))
    wp_ref: (C, 4C) bf16          -- tap 5, nonzero only in phase-0 columns (x[m-1] contribution)
    wn_ref: (C, 4C) bf16          -- tap 0, nonzero only in phase-3 columns (x[m+1] contribution)
    """
    tl = xt_ref.shape[2] - 2
    x_cur = xt_ref[0, 0, 1:tl + 1, :]   # x[m]
    x_prev = xt_ref[0, 0, 0:tl, :]      # x[m-1] (row 0 = halo, zero at sequence start)
    x_next = xt_ref[0, 0, 2:tl + 2, :]  # x[m+1] (last row = halo, zero at sequence end)
    # Three accumulating MXU dots, bf16 operands, f32 accumulation.
    y = jnp.dot(x_cur, wc_ref[...], preferred_element_type=jnp.float32)
    y = y + jnp.dot(x_prev, wp_ref[...], preferred_element_type=jnp.float32)
    y = y + jnp.dot(x_next, wn_ref[...], preferred_element_type=jnp.float32)
    return y  # (TL, 4C) float32


def _stats_kernel(xt_ref, wc_ref, wp_ref, wn_ref, stats_ref):
    """Pass 1: per-tile BN partial statistics only (no conv intermediate written to HBM)."""
    y = _conv_tile(xt_ref, wc_ref, wp_ref, wn_ref)
    stats_ref[0, 0, 0:1, :] = jnp.sum(y, axis=0, keepdims=True)        # sum
    stats_ref[0, 0, 1:2, :] = jnp.sum(y * y, axis=0, keepdims=True)    # sum of squares


def _apply_kernel(xt_ref, wc_ref, wp_ref, wn_ref, inv_ref, shift_ref, o_ref):
    """Pass 2: recompute the conv tile, apply BN affine + ReLU, write lane-dense output."""
    y = _conv_tile(xt_ref, wc_ref, wp_ref, wn_ref)
    o_ref[0] = jnp.maximum(y * inv_ref[...] + shift_ref[...], 0.0)


def _pick_tile_rows(L, requested, C, N):
    """Largest row tile TL that divides L, is a multiple of 8 (or == L), within a VMEM budget."""
    if requested is not None:
        if L % requested != 0 or not (requested % 8 == 0 or requested == L):
            raise ValueError(
                f"tile_rows={requested} must divide L={L} and be a multiple of 8 (or equal L)")
        return requested
    # Rough per-row VMEM bytes (double-buffered bf16 input tile, double-buffered f32 output
    # tile, in-kernel f32 accumulator). Keep well inside the default 32 MiB scoped limit so
    # the same tiling fits v5e/v6e (128 MiB) and v7x (64 MiB) without spilling.
    bytes_per_row = 2 * (C * 2) + 2 * (4 * C * 4) + (4 * C * 4) + 64
    budget = 8 * 1024 * 1024
    cap = min(L, max(8, budget // bytes_per_row))
    if N == 1 and L >= 16:
        # keep at least 2 row tiles so both v7x TensorCores get work when batch == 1
        cap = min(cap, max(8, (L // 2) // 8 * 8))
    best = None
    for tl in range(8, cap + 1, 8):
        if L % tl == 0:
            best = tl
    return best if best is not None else L


@partial(jax.jit, static_argnames=("tile_rows",))
def upsample4(x_ncl, weight, bias, gamma, beta, *, tile_rows=None):
    """UpSample4.forward (training mode): ConvTranspose1d(k=6,s=4,p=1) -> BatchNorm1d -> ReLU.

    x_ncl: (N, C, L); weight: (Cin, Cout, 6) PyTorch ConvTranspose1d layout. Returns (N, C, 4L) f32.
    The conv bias is accepted for API parity but unused: a per-channel constant is exactly
    cancelled by the training-mode BatchNorm mean subtraction (and leaves the variance unchanged).
    """
    del bias
    N, C, L = x_ncl.shape
    TL = _pick_tile_rows(L, tile_rows, C, N)
    nT = L // TL
    f32, bf16 = jnp.float32, jnp.bfloat16

    # ---- wrapper glue: channels-last bf16 tiles with a 1-row halo on each side ----------------
    x_nlc = jnp.transpose(x_ncl, (0, 2, 1)).astype(bf16)                    # (N, L, C)
    core = x_nlc.reshape(N, nT, TL, C)
    zrow = jnp.zeros((N, 1, C), bf16)
    prev = jnp.concatenate([zrow, core[:, :-1, TL - 1, :]], axis=1)[:, :, None, :]  # (N,nT,1,C)
    nxt = jnp.concatenate([core[:, 1:, 0, :], zrow], axis=1)[:, :, None, :]         # (N,nT,1,C)
    x_tiles = jnp.concatenate([prev, core, nxt], axis=2)                    # (N, nT, TL+2, C)

    # Per-tap weight blocks (C, 4C) in bf16; phase p occupies columns [p*C, (p+1)*C).
    w = weight.astype(f32)
    wc = jnp.concatenate([w[:, :, 1], w[:, :, 2], w[:, :, 3], w[:, :, 4]], axis=1).astype(bf16)
    wp = jnp.pad(w[:, :, 5], ((0, 0), (0, 3 * C))).astype(bf16)             # x[m-1] -> phase 0
    wn = jnp.pad(w[:, :, 0], ((0, 0), (3 * C, 0))).astype(bf16)             # x[m+1] -> phase 3

    cparams = pltpu.CompilerParams(
        dimension_semantics=("parallel", "parallel"),
        vmem_limit_bytes=64 * 1024 * 1024)

    x_spec = pl.BlockSpec((1, 1, TL + 2, C), lambda n, t: (n, t, 0, 0))
    w_spec = pl.BlockSpec((C, 4 * C), lambda n, t: (0, 0))
    # TODO(synk): single-buffer the constant weight blocks (pipeline_mode) for very large C to
    # save VMEM on v7x; irrelevant at these sizes.

    # ---- pass 1: per-tile BN partial sums only (no conv intermediate in HBM) ------------------
    stats = pl.pallas_call(
        _stats_kernel,
        out_shape=jax.ShapeDtypeStruct((N, nT, 2, 4 * C), f32),
        grid_spec=pltpu.PrefetchScalarGridSpec(
            num_scalar_prefetch=0,
            grid=(N, nT),
            in_specs=[x_spec, w_spec, w_spec, w_spec],
            out_specs=pl.BlockSpec((1, 1, 2, 4 * C), lambda n, t: (n, t, 0, 0)),
        ),
        compiler_params=cparams,
    )(x_tiles, wc, wp, wn)

    # ---- fold tiny partials in plain JAX: per-channel over batch, length and the 4 phases -----
    total = stats.sum(axis=(0, 1))                              # (2, 4C)
    cnt = jnp.float32(N) * jnp.float32(4 * L)
    mean_c = total[0].reshape(4, C).sum(axis=0) / cnt           # (C,)
    ex2_c = total[1].reshape(4, C).sum(axis=0) / cnt
    # TODO(synk): E[y^2]-mean^2 in f32 can cancel badly if |mean| >> std; use a shifted/Welford
    # fold if that regime matters.
    var_c = jnp.maximum(ex2_c - mean_c * mean_c, 0.0)           # biased batch variance
    inv_c = gamma.astype(f32) * lax.rsqrt(var_c + EPS)
    shift_c = beta.astype(f32) - mean_c * inv_c
    inv_lane = jnp.tile(inv_c, 4).reshape(1, 4 * C)             # lane layout = phase*C + channel
    shift_lane = jnp.tile(shift_c, 4).reshape(1, 4 * C)

    # ---- pass 2: recompute conv tile, BN affine + ReLU, write lane-dense output ---------------
    out = pl.pallas_call(
        _apply_kernel,
        out_shape=jax.ShapeDtypeStruct((N, L, 4 * C), f32),
        grid_spec=pltpu.PrefetchScalarGridSpec(
            num_scalar_prefetch=0,
            grid=(N, nT),
            in_specs=[x_spec, w_spec, w_spec, w_spec,
                      pl.BlockSpec((1, 4 * C), lambda n, t: (0, 0)),
                      pl.BlockSpec((1, 4 * C), lambda n, t: (0, 0))],
            out_specs=pl.BlockSpec((1, TL, 4 * C), lambda n, t: (n, t, 0)),
        ),
        compiler_params=cparams,
    )(x_tiles, wc, wp, wn, inv_lane, shift_lane)

    # (N, L, 4C) with lane index p*C + c  ->  (N, 4L, C) is a pure row-major reshape.
    y = out.reshape(N, 4 * L, C)
    # TODO(synk): if downstream accepts channels-last, return `y` directly and skip this
    # output-sized transpose (it is the only remaining HBM round trip outside Pallas).
    return jnp.transpose(y, (0, 2, 1))
    # TODO(synk): BatchNorm running_mean/running_var side-effect updates are not modeled
    # (training-mode forward output only).


def reference(x, W, b, gamma, beta):
    """Direct numpy reference of ConvTranspose1d(k=6,s=4,p=1) + BN(train) + ReLU."""
    N, C, L = x.shape
    Lo = 4 * L
    y = np.zeros((N, C, Lo), np.float32)
    for n in range(N):
        for li in range(L):
            for k in range(6):
                lo = 4 * li - 1 + k
                if 0 <= lo < Lo:
                    y[n, :, lo] += x[n, :, li] @ W[:, :, k]
    y += b[None, :, None]
    mean = y.mean(axis=(0, 2))
    var = y.var(axis=(0, 2))  # biased, as BatchNorm uses for normalization
    yn = (y - mean[None, :, None]) / np.sqrt(var[None, :, None] + EPS)
    yn = yn * gamma[None, :, None] + beta[None, :, None]
    return np.maximum(yn, 0.0)


if __name__ == "__main__":
    N, C, L = 2, 4, 16  # small shapes consistent with UpSample4(in_c=4) on (N, C, L)

    key = jax.random.PRNGKey(0)
    k_x, k_w, k_b, k_g, k_bt = jax.random.split(key, 5)
    x = jax.random.normal(k_x, (N, C, L), jnp.float32)
    weight = jax.random.normal(k_w, (C, C, 6), jnp.float32) * 0.3   # (Cin, Cout, K)
    bias = jax.random.normal(k_b, (C,), jnp.float32) * 0.1
    gamma = 1.0 + 0.1 * jax.random.normal(k_g, (C,), jnp.float32)
    beta = 0.1 * jax.random.normal(k_bt, (C,), jnp.float32)

    y_ref = reference(np.asarray(x), np.asarray(weight), np.asarray(bias),
                      np.asarray(gamma), np.asarray(beta))

    # Multi-tile path (TL=8, two tiles per sequence) exercises the halo handling.
    y_tiled = jax.block_until_ready(upsample4(x, weight, bias, gamma, beta, tile_rows=8))
    assert y_tiled.shape == (N, C, 4 * L), y_tiled.shape
    # bf16 MXU operands -> bf16-appropriate tolerances (accumulation/stats are f32).
    np.testing.assert_allclose(np.asarray(y_tiled), y_ref, rtol=2e-2, atol=3e-2)

    # Default path (one tile per sequence).
    y_full = jax.block_until_ready(upsample4(x, weight, bias, gamma, beta))
    np.testing.assert_allclose(np.asarray(y_full), y_ref, rtol=2e-2, atol=3e-2)

    print("KERNEL_OK")
</pallas_src>

<mosaic_0001>
module attributes {stable_mosaic.version = 11 : i64} {
  func.func @_stats_kernel(%arg0: i32, %arg1: i32, %arg2: memref<1x1x10x4xbf16, #tpu.memory_space<vmem>>, %arg3: memref<4x16xbf16, #tpu.memory_space<vmem>>, %arg4: memref<4x16xbf16, #tpu.memory_space<vmem>>, %arg5: memref<4x16xbf16, #tpu.memory_space<vmem>>, %arg6: memref<1x1x2x16xf32, #tpu.memory_space<vmem>>) attributes {dimension_semantics = [#tpu.dimension_semantics<parallel>, #tpu.dimension_semantics<parallel>], iteration_bounds = array<i64: 2, 2>, scalar_prefetch = 0 : i64, scratch_operands = 0 : i64, tpu.core_type = #tpu.core_type<tc>, window_params = [{transform_indices = @transform_0, window_bounds = array<i64: 1, 1, 10, 4>}, {pipeline_mode = #tpu.pipeline_mode<synchronous>, transform_indices = @transform_1, window_bounds = array<i64: 4, 16>}, {pipeline_mode = #tpu.pipeline_mode<synchronous>, transform_indices = @transform_2, window_bounds = array<i64: 4, 16>}, {pipeline_mode = #tpu.pipeline_mode<synchronous>, transform_indices = @transform_3, window_bounds = array<i64: 4, 16>}, {transform_indices = @transform_4, window_bounds = array<i64: 1, 1, 2, 16>}]} {
    %c0 = arith.constant 0 : index
    %c0_0 = arith.constant 0 : index
    %c1 = arith.constant 1 : index
    %c0_1 = arith.constant 0 : index
    %0 = vector.load %arg2[%c0, %c0_0, %c1, %c0_1] : memref<1x1x10x4xbf16, #tpu.memory_space<vmem>>, vector<1x1x8x4xbf16>
    %1 = vector.shape_cast %0 : vector<1x1x8x4xbf16> to vector<8x4xbf16>
    %c0_2 = arith.constant 0 : index
    %c0_3 = arith.constant 0 : index
    %c0_4 = arith.constant 0 : index
    %c0_5 = arith.constant 0 : index
    %2 = vector.load %arg2[%c0_2, %c0_3, %c0_4, %c0_5] : memref<1x1x10x4xbf16, #tpu.memory_space<vmem>>, vector<1x1x8x4xbf16>
    %3 = vector.shape_cast %2 : vector<1x1x8x4xbf16> to vector<8x4xbf16>
    %c0_6 = arith.constant 0 : index
    %c0_7 = arith.constant 0 : index
    %c2 = arith.constant 2 : index
    %c0_8 = arith.constant 0 : index
    %4 = vector.load %arg2[%c0_6, %c0_7, %c2, %c0_8] : memref<1x1x10x4xbf16, #tpu.memory_space<vmem>>, vector<1x1x8x4xbf16>
    %5 = vector.shape_cast %4 : vector<1x1x8x4xbf16> to vector<8x4xbf16>
    %c0_9 = arith.constant 0 : index
    %c0_10 = arith.constant 0 : index
    %6 = vector.load %arg3[%c0_9, %c0_10] : memref<4x16xbf16, #tpu.memory_space<vmem>>, vector<4x16xbf16>
    %cst = arith.constant dense<0.000000e+00> : vector<8x16xf32>
    %7 = tpu.matmul %1, %6, %cst {dimension_numbers = #tpu.dot_dimension_numbers<[1], [0], [0], [1], [0, 0, 1, 1], [], []>} : vector<8x4xbf16>, vector<4x16xbf16>, vector<8x16xf32> -> vector<8x16xf32>
    %c0_11 = arith.constant 0 : index
    %c0_12 = arith.constant 0 : index
    %8 = vector.load %arg4[%c0_11, %c0_12] : memref<4x16xbf16, #tpu.memory_space<vmem>>, vector<4x16xbf16>
    %cst_13 = arith.constant dense<0.000000e+00> : vector<8x16xf32>
    %9 = tpu.matmul %3, %8, %cst_13 {dimension_numbers = #tpu.dot_dimension_numbers<[1], [0], [0], [1], [0, 0, 1, 1], [], []>} : vector<8x4xbf16>, vector<4x16xbf16>, vector<8x16xf32> -> vector<8x16xf32>
    %10 = arith.addf %7, %9 : vector<8x16xf32>
    %c0_14 = arith.constant 0 : index
    %c0_15 = arith.constant 0 : index
    %11 = vector.load %arg5[%c0_14, %c0_15] : memref<4x16xbf16, #tpu.memory_space<vmem>>, vector<4x16xbf16>
    %cst_16 = arith.constant dense<0.000000e+00> : vector<8x16xf32>
    %12 = tpu.matmul %5, %11, %cst_16 {dimension_numbers = #tpu.dot_dimension_numbers<[1], [0], [0], [1], [0, 0, 1, 1], [], []>} : vector<8x4xbf16>, vector<4x16xbf16>, vector<8x16xf32> -> vector<8x16xf32>
    %13 = arith.addf %10, %12 : vector<8x16xf32>
    %cst_17 = arith.constant dense<0.000000e+00> : vector<16xf32>
    %14 = vector.multi_reduction <add>, %13, %cst_17 [0] : vector<8x16xf32> to vector<16xf32>
    %15 = vector.shape_cast %14 : vector<16xf32> to vector<1x16xf32>
    %c0_18 = arith.constant 0 : index
    %c0_19 = arith.constant 0 : index
    %c0_20 = arith.constant 0 : index
    %c0_21 = arith.constant 0 : index
    %16 = vector.load %arg6[%c0_18, %c0_19, %c0_20, %c0_21] : memref<1x1x2x16xf32, #tpu.memory_space<vmem>>, vector<1x1x1x16xf32>
    %17 = vector.shape_cast %16 : vector<1x1x1x16xf32> to vector<1x16xf32>
    %18 = vector.shape_cast %15 : vector<1x16xf32> to vector<1x1x1x16xf32>
    tpu.vector_store %arg6[%c0_18, %c0_19, %c0_20, %c0_21], %18 {strides = array<i32>} : memref<1x1x2x16xf32, #tpu.memory_space<vmem>>, vector<1x1x1x16xf32>,
    %19 = arith.mulf %13, %13 : vector<8x16xf32>
    %cst_22 = arith.constant dense<0.000000e+00> : vector<16xf32>
    %20 = vector.multi_reduction <add>, %19, %cst_22 [0] : vector<8x16xf32> to vector<16xf32>
    %21 = vector.shape_cast %20 : vector<16xf32> to vector<1x16xf32>
    %c0_23 = arith.constant 0 : index
    %c0_24 = arith.constant 0 : index
    %c1_25 = arith.constant 1 : index
    %c0_26 = arith.constant 0 : index
    %22 = vector.load %arg6[%c0_23, %c0_24, %c1_25, %c0_26] : memref<1x1x2x16xf32, #tpu.memory_space<vmem>>, vector<1x1x1x16xf32>
    %23 = vector.shape_cast %22 : vector<1x1x1x16xf32> to vector<1x16xf32>
    %24 = vector.shape_cast %21 : vector<1x16xf32> to vector<1x1x1x16xf32>
    tpu.vector_store %arg6[%c0_23, %c0_24, %c1_25, %c0_26], %24 {strides = array<i32>} : memref<1x1x2x16xf32, #tpu.memory_space<vmem>>, vector<1x1x1x16xf32>,
    return
  }
  func.func @transform_0(%arg0: i32, %arg1: i32) -> (i32, i32, i32, i32) {
    %c0_i32 = arith.constant 0 : i32
    %c0_i32_0 = arith.constant 0 : i32
    %c0_i32_1 = arith.constant 0 : i32
    return %arg0, %arg1, %c0_i32, %c0_i32_0 : i32, i32, i32, i32
  }
  func.func @transform_1(%arg0: i32, %arg1: i32) -> (i32, i32) {
    %c0_i32 = arith.constant 0 : i32
    %c0_i32_0 = arith.constant 0 : i32
    %c0_i32_1 = arith.constant 0 : i32
    return %c0_i32, %c0_i32_0 : i32, i32
  }
  func.func @transform_2(%arg0: i32, %arg1: i32) -> (i32, i32) {
    %c0_i32 = arith.constant 0 : i32
    %c0_i32_0 = arith.constant 0 : i32
    %c0_i32_1 = arith.constant 0 : i32
    return %c0_i32, %c0_i32_0 : i32, i32
  }
  func.func @transform_3(%arg0: i32, %arg1: i32) -> (i32, i32) {
    %c0_i32 = arith.constant 0 : i32
    %c0_i32_0 = arith.constant 0 : i32
    %c0_i32_1 = arith.constant 0 : i32
    return %c0_i32, %c0_i32_0 : i32, i32
  }
  func.func @transform_4(%arg0: i32, %arg1: i32) -> (i32, i32, i32, i32) {
    %c0_i32 = arith.constant 0 : i32
    %c0_i32_0 = arith.constant 0 : i32
    %c0_i32_1 = arith.constant 0 : i32
    return %arg0, %arg1, %c0_i32, %c0_i32_0 : i32, i32, i32, i32
  }
}

module attributes {stable_mosaic.version = 11 : i64} {
  func.func @_apply_kernel(%arg0: i32, %arg1: i32, %arg2: memref<1x1x10x4xbf16, #tpu.memory_space<vmem>>, %arg3: memref<4x16xbf16, #tpu.memory_space<vmem>>, %arg4: memref<4x16xbf16, #tpu.memory_space<vmem>>, %arg5: memref<4x16xbf16, #tpu.memory_space<vmem>>, %arg6: memref<1x16xf32, #tpu.memory_space<vmem>>, %arg7: memref<1x16xf32, #tpu.memory_space<vmem>>, %arg8: memref<1x8x16xf32, #tpu.memory_space<vmem>>) attributes {dimension_semantics = [#tpu.dimension_semantics<parallel>, #tpu.dimension_semantics<parallel>], iteration_bounds = array<i64: 2, 2>, scalar_prefetch = 0 : i64, scratch_operands = 0 : i64, tpu.core_type = #tpu.core_type<tc>, window_params = [{transform_indices = @transform_0, window_bounds = array<i64: 1, 1, 10, 4>}, {pipeline_mode = #tpu.pipeline_mode<synchronous>, transform_indices = @transform_1, window_bounds = array<i64: 4, 16>}, {pipeline_mode = #tpu.pipeline_mode<synchronous>, transform_indices = @transform_2, window_bounds = array<i64: 4, 16>}, {pipeline_mode = #tpu.pipeline_mode<synchronous>, transform_indices = @transform_3, window_bounds = array<i64: 4, 16>}, {pipeline_mode = #tpu.pipeline_mode<synchronous>, transform_indices = @transform_4, window_bounds = array<i64: 1, 16>}, {pipeline_mode = #tpu.pipeline_mode<synchronous>, transform_indices = @transform_5, window_bounds = array<i64: 1, 16>}, {transform_indices = @transform_6, window_bounds = array<i64: 1, 8, 16>}]} {
    %c0 = arith.constant 0 : index
    %c0_0 = arith.constant 0 : index
    %c1 = arith.constant 1 : index
    %c0_1 = arith.constant 0 : index
    %0 = vector.load %arg2[%c0, %c0_0, %c1, %c0_1] : memref<1x1x10x4xbf16, #tpu.memory_space<vmem>>, vector<1x1x8x4xbf16>
    %1 = vector.shape_cast %0 : vector<1x1x8x4xbf16> to vector<8x4xbf16>
    %c0_2 = arith.constant 0 : index
    %c0_3 = arith.constant 0 : index
    %c0_4 = arith.constant 0 : index
    %c0_5 = arith.constant 0 : index
    %2 = vector.load %arg2[%c0_2, %c0_3, %c0_4, %c0_5] : memref<1x1x10x4xbf16, #tpu.memory_space<vmem>>, vector<1x1x8x4xbf16>
    %3 = vector.shape_cast %2 : vector<1x1x8x4xbf16> to vector<8x4xbf16>
    %c0_6 = arith.constant 0 : index
    %c0_7 = arith.constant 0 : index
    %c2 = arith.constant 2 : index
    %c0_8 = arith.constant 0 : index
    %4 = vector.load %arg2[%c0_6, %c0_7, %c2, %c0_8] : memref<1x1x10x4xbf16, #tpu.memory_space<vmem>>, vector<1x1x8x4xbf16>
    %5 = vector.shape_cast %4 : vector<1x1x8x4xbf16> to vector<8x4xbf16>
    %c0_9 = arith.constant 0 : index
    %c0_10 = arith.constant 0 : index
    %6 = vector.load %arg3[%c0_9, %c0_10] : memref<4x16xbf16, #tpu.memory_space<vmem>>, vector<4x16xbf16>
    %cst = arith.constant dense<0.000000e+00> : vector<8x16xf32>
    %7 = tpu.matmul %1, %6, %cst {dimension_numbers = #tpu.dot_dimension_numbers<[1], [0], [0], [1], [0, 0, 1, 1], [], []>} : vector<8x4xbf16>, vector<4x16xbf16>, vector<8x16xf32> -> vector<8x16xf32>
    %c0_11 = arith.constant 0 : index
    %c0_12 = arith.constant 0 : index
    %8 = vector.load %arg4[%c0_11, %c0_12] : memref<4x16xbf16, #tpu.memory_space<vmem>>, vector<4x16xbf16>
    %cst_13 = arith.constant dense<0.000000e+00> : vector<8x16xf32>
    %9 = tpu.matmul %3, %8, %cst_13 {dimension_numbers = #tpu.dot_dimension_numbers<[1], [0], [0], [1], [0, 0, 1, 1], [], []>} : vector<8x4xbf16>, vector<4x16xbf16>, vector<8x16xf32> -> vector<8x16xf32>
    %10 = arith.addf %7, %9 : vector<8x16xf32>
    %c0_14 = arith.constant 0 : index
    %c0_15 = arith.constant 0 : index
    %11 = vector.load %arg5[%c0_14, %c0_15] : memref<4x16xbf16, #tpu.memory_space<vmem>>, vector<4x16xbf16>
    %cst_16 = arith.constant dense<0.000000e+00> : vector<8x16xf32>
    %12 = tpu.matmul %5, %11, %cst_16 {dimension_numbers = #tpu.dot_dimension_numbers<[1], [0], [0], [1], [0, 0, 1, 1], [], []>} : vector<8x4xbf16>, vector<4x16xbf16>, vector<8x16xf32> -> vector<8x16xf32>
    %13 = arith.addf %10, %12 : vector<8x16xf32>
    %c0_17 = arith.constant 0 : index
    %c0_18 = arith.constant 0 : index
    %14 = vector.load %arg6[%c0_17, %c0_18] : memref<1x16xf32, #tpu.memory_space<vmem>>, vector<1x16xf32>
    %15 = vector.broadcast %14 : vector<1x16xf32> to vector<8x16xf32>
    %16 = arith.mulf %13, %15 : vector<8x16xf32>
    %c0_19 = arith.constant 0 : index
    %c0_20 = arith.constant 0 : index
    %17 = vector.load %arg7[%c0_19, %c0_20] : memref<1x16xf32, #tpu.memory_space<vmem>>, vector<1x16xf32>
    %18 = vector.broadcast %17 : vector<1x16xf32> to vector<8x16xf32>
    %19 = arith.addf %16, %18 : vector<8x16xf32>
    %cst_21 = arith.constant 0.000000e+00 : f32
    %20 = vector.broadcast %cst_21 : f32 to vector<8x16xf32>
    %21 = arith.maximumf %19, %20 : vector<8x16xf32>
    %c0_22 = arith.constant 0 : index
    %c0_23 = arith.constant 0 : index
    %c0_24 = arith.constant 0 : index
    %22 = vector.load %arg8[%c0_22, %c0_23, %c0_24] : memref<1x8x16xf32, #tpu.memory_space<vmem>>, vector<1x8x16xf32>
    %23 = vector.shape_cast %22 : vector<1x8x16xf32> to vector<8x16xf32>
    %24 = vector.shape_cast %21 : vector<8x16xf32> to vector<1x8x16xf32>
    tpu.vector_store %arg8[%c0_22, %c0_23, %c0_24], %24 {strides = array<i32>} : memref<1x8x16xf32, #tpu.memory_space<vmem>>, vector<1x8x16xf32>,
    return
  }
  func.func @transform_0(%arg0: i32, %arg1: i32) -> (i32, i32, i32, i32) {
    %c0_i32 = arith.constant 0 : i32
    %c0_i32_0 = arith.constant 0 : i32
    %c0_i32_1 = arith.constant 0 : i32
    return %arg0, %arg1, %c0_i32, %c0_i32_0 : i32, i32, i32, i32
  }
  func.func @transform_1(%arg0: i32, %arg1: i32) -> (i32, i32) {
    %c0_i32 = arith.constant 0 : i32
    %c0_i32_0 = arith.constant 0 : i32
    %c0_i32_1 = arith.constant 0 : i32
    return %c0_i32, %c0_i32_0 : i32, i32
  }
  func.func @transform_2(%arg0: i32, %arg1: i32) -> (i32, i32) {
    %c0_i32 = arith.constant 0 : i32
    %c0_i32_0 = arith.constant 0 : i32
    %c0_i32_1 = arith.constant 0 : i32
    return %c0_i32, %c0_i32_0 : i32, i32
  }
  func.func @transform_3(%arg0: i32, %arg1: i32) -> (i32, i32) {
    %c0_i32 = arith.constant 0 : i32
    %c0_i32_0 = arith.constant 0 : i32
    %c0_i32_1 = arith.constant 0 : i32
    return %c0_i32, %c0_i32_0 : i32, i32
  }
  func.func @transform_4(%arg0: i32, %arg1: i32) -> (i32, i32) {
    %c0_i32 = arith.constant 0 : i32
    %c0_i32_0 = arith.constant 0 : i32
    %c0_i32_1 = arith.constant 0 : i32
    return %c0_i32, %c0_i32_0 : i32, i32
  }
  func.func @transform_5(%arg0: i32, %arg1: i32) -> (i32, i32) {
    %c0_i32 = arith.constant 0 : i32
    %c0_i32_0 = arith.constant 0 : i32
    %c0_i32_1 = arith.constant 0 : i32
    return %c0_i32, %c0_i32_0 : i32, i32
  }
  func.func @transform_6(%arg0: i32, %arg1: i32) -> (i32, i32, i32) {
    %c0_i32 = arith.constant 0 : i32
    %c0_i32_0 = arith.constant 0 : i32
    return %arg0, %arg1, %c0_i32 : i32, i32, i32
  }
}

</mosaic_0001>

<bundles_post_ra>
// kernel: squeeze.18
= control target key start
LH: loop header
LB: loop body
LE: loop exit
PB: predicated region body
PF: predicated region fallthrough
CT: control target
= control target key end

     0   :  { %s40_s8 = smov 116   ;;  %vm8_vm0 = vcmask 31744   ;;  %s41_s9 = smov 120   ;;  %s58_s0 = inlined_call_operand.vmem [shape: f32[16], index: 0, kind: input, shape index: {}]   ;;  %s59_s1 = inlined_call_operand.vmem [shape: f32[4,4], index: 1, kind: output, shape index: {}]  }
   0x1   :  { %v5_v0 = vld [vmem:[%s58_s0] sm:$0x1]  ;;  %s39_s0 = smov 124  }
   0x2   :  { %6 = vst [vmem:[#allocation1] sm:$0x1] %v5_v0 }
   0x9   :  { %v10_v1 = vld [vmem:[#allocation1] sm:$0x1]  }
   0xa   :  { %v22_v2 = vld [vmem:[#allocation1] sm:$0x1]   ;;  %11 = vrot.lane.b32.xlu0 %v10_v1, %s39_s0 }
   0xb   :  { %23 = vrot.lane.b32.xlu1 %v22_v2, %s40_s8  ;;  %v7_v3 = vld [vmem:[#allocation1] sm:$0x1]  }
   0xc   :  { %v16_v4 = vld [vmem:[#allocation1] sm:$0x1]   ;;  %9 = vst.msk [vmem:[#allocation0] sm:$0x1] %vm8_vm0, %v7_v3  }
   0xe   :  { %17 = vrot.lane.b32.xlu0 %v16_v4, %s41_s9 }
  0x7c   :  { %v12_v5 = vpop.permute.xlu0 %11  }
  0x7d   :  { %v24_v6 = vpop.permute.xlu1 %23   ;;  %15 = vst.msk [vmem:[#allocation0 + $0x1] sm:$0x1] %vm8_vm0, %v12_v5  }
  0x7e   :  { %27 = vst.msk [vmem:[#allocation0 + $0x3] sm:$0x1] %vm8_vm0, %v24_v6  }
  0x80   :  { %v18_v7 = vpop.permute.xlu0 %17  }
  0x81   :  { %21 = vst.msk [vmem:[#allocation0 + $0x2] sm:$0x1] %vm8_vm0, %v18_v7  }
  0x88   :  { %v32_v8 = vld [vmem:[#allocation0] sm:$0xf] }
  0x89   :  { %35 = vst [vmem:[%s59_s1] sm:$0xf] %v32_v8 }

// kernel: tile.18
= control target key start
LH: loop header
LB: loop body
LE: loop exit
PB: predicated region body
PF: predicated region fallthrough
CT: control target
= control target key end

     0   :  { %s22_s0 = inlined_call_operand.vmem [shape: f32[4], index: 0, kind: input, shape index: {}]   ;;  %s23_s1 = inlined_call_operand.vmem [shape: f32[4,4], index: 1, kind: output, shape index: {}]  }
   0x1   :  { %v4_v0 = vld [vmem:[%s22_s0] ss:$0 sm:$0xff] }
   0x2   :  { %5 = vst [vmem:[%s23_s1] sm:$0xf] %v4_v0 }

// kernel: tile.19
= control target key start
LH: loop header
LB: loop body
LE: loop exit
PB: predicated region body
PF: predicated region fallthrough
CT: control target
= control target key end

     0   :  { %vm8_vm0 = vcmask 31744   ;;  %s40_s8 = smov 4   ;;  %s41_s9 = smov 8   ;;  %vm14_vm1 = vcmask 130144   ;;  %vm20_vm2 = vcmask 97344   ;;  %vm26_vm3 = vcmask 64544   ;;  %s58_s0 = inlined_call_operand.vmem [shape: f32[4,4], index: 0, kind: input, shape index: {}]   ;;  %s59_s1 = inlined_call_operand.vmem [shape: f32[1,16], index: 1, kind: output, shape index: {}]  }
   0x1   :  { %v5_v0 = vld [vmem:[%s58_s0] sm:$0xf]  ;;  %s39_s0 = smov 12  }
   0x2   :  { %6 = vst [vmem:[#allocation1] sm:$0xf] %v5_v0 }
   0x9   :  { %v11_v1 = vld [vmem:[#allocation1 + $0x3] sm:$0x1]   ;;  %v23_v2 = vld [vmem:[#allocation1 + $0x1] sm:$0x1]   ;;  %v7_v3 = vld [vmem:[#allocation1] sm:$0x1]  }
   0xa   :  { %12 = vrot.lane.b32.xlu0 %v11_v1, %s39_s0  ;;  %24 = vrot.lane.b32.xlu1 %v23_v2, %s40_s8  ;;  %v17_v4 = vld [vmem:[#allocation1 + $0x2] sm:$0x1]   ;;  %9 = vst.msk [vmem:[#allocation0] sm:$0x1] %vm8_vm0, %v7_v3  }
   0xe   :  { %18 = vrot.lane.b32.xlu0 %v17_v4, %s41_s9 }
  0x7c   :  { %v13_v5 = vpop.permute.xlu0 %12   ;;  %v25_v6 = vpop.permute.xlu1 %24  }
  0x7d   :  { %15 = vst.msk [vmem:[#allocation0] sm:$0x1] %vm14_vm1, %v13_v5  }
  0x80   :  { %v19_v7 = vpop.permute.xlu0 %18  }
  0x81   :  { %21 = vst.msk [vmem:[#allocation0] sm:$0x1] %vm20_vm2, %v19_v7  }
  0x82   :  { %27 = vst.msk [vmem:[#allocation0] sm:$0x1] %vm26_vm3, %v25_v6  }
  0x89   :  { %v32_v8 = vld [vmem:[#allocation0] sm:$0x1] }
  0x8a   :  { %35 = vst [vmem:[%s59_s1] sm:$0x1] %v32_v8 }

// kernel: upsample4.2
= control target key start
LH: loop header
LB: loop body
LE: loop exit
PB: predicated region body
PF: predicated region fallthrough
CT: control target
= control target key end

     0   :  { %s656_s15 = smov 0   ;;  %s658_s16 = smov 0   ;;  %s728_s0 = inlined_call_operand.vmem [shape: bf16[2,2,10,4], index: 0, kind: input, shape index: {}]   ;;  %s729_s1 = inlined_call_operand.vmem [shape: bf16[4,16], index: 1, kind: input, shape index: {}]   ;;  %s730_s2 = inlined_call_operand.vmem [shape: bf16[4,16], index: 2, kind: input, shape index: {}]   ;;  %s731_s3 = inlined_call_operand.vmem [shape: bf16[4,16], index: 3, kind: input, shape index: {}]   ;;  %s732_s4 = inlined_call_operand.vmem [shape: f32[2,2,2,16], index: 4, kind: output, shape index: {}]  }
   0x1   :  { %s660_s17 = smov 0   ;;  %s662_s18 = smov 0  }
   0x2   :  { %s664_s19 = smov 0  }
   0x3 LB: > { %s23_s20 = sadd.s32 1, %s619_s17  ;;  %s26_s21 = sadd.s32 1, %s623_s18  ;;  %s627_s19 = sphi %s664_s19, %s14_s19   ;;  %s623_s18 = sphi %s662_s18, %s736_s18   ;;  %s619_s17 = sphi %s660_s17, %s735_s17   ;;  %s615_s16 = sphi %s658_s16, %s734_s16   ;;  %s611_s15 = sphi %s656_s15, %s733_s15  }
   0x4   : > { %p24_p0 = scmp.ge.s32.totalorder %s23_s20, 2  ;;  %p508_p1 = scmp.ge.s32.totalorder %s627_s19, 1 }
   0x5   : > { %p182_p2 = scmp.lt.s32.totalorder %s627_s19, 5 }
   0x6   : > { %s738_s20 = smov (%p24_p0, %s23_s20), 0  ;;  %s740_s21 = smov (!%p24_p0, %s26_s21), %s623_s18 }
   0x7   : > { %p183_p3 = pnand %p508_p1, %p182_p2  ;;  %p28_p4 = scmp.ge.s32.totalorder %s740_s21, 2 }
   0x8   : > { %p215_p5 = scmp.lt.s32.totalorder (!%p183_p3), %s615_s16, 1  ;;  %p217_p6 = scmp.lt.s32.totalorder (!%p183_p3), %s611_s15, 1 }
   0x9   : > { %s742_s21 = smov (%p28_p4, %s740_s21), 0  ;;  %186 = sbr.rel (%p183_p3) target bundleno = 242 (0xf2), region = 36 }
   0xe   : > { %v237_v0 = vld [vmem:[%s730_s2] sm:$0x3]  ;;  %vm242_vm0 = vcmask 1041408   ;;  %v629_v1 = vmov 0.0   ;;  %vm630_vm1 = vmmov 0   ;;  %s744_s16 = smov (!%p215_p5, %s615_s16), 1 }
   0xf   : > { %527 = vmatprep.subr.bf16.mxu0 %v629_v1  ;;  %v244_v2 = vsel %vm242_vm0, %v237_v0, 0  ;;  %529 = vmatprep.mubr.msk.bf16.mxu0 %vm630_vm1, %v629_v1  ;;  %v236_v3 = vld [vmem:[%s729_s1] sm:$0x3]  ;;  %s746_s15 = smov (!%p217_p6, %s611_s15), 1  ;;  %s510_s26 = sshll.u32 %s744_s16, 2  ;;  %vm238_vm2 = vcmask 31744  }
  0x10   : > { %528 = vmatpush3.bf16.msra.mxu0 %v244_v2  ;;  %533 = vmatprep.subr.bf16.mxu1 %v629_v1  ;;  %v302_v4 = vsel %vm242_vm0, %v236_v3, 0  ;;  %s512_s27 = sshll.u32 %s744_s16, 1  ;;  %s509_s28 = sshll.u32 %s746_s15, 1  ;;  %v344_v5 = vld [vmem:[%s731_s3] sm:$0x3]  ;;  %vm396_vm3 = vcmask 130048  }
  0x11   : > { %539 = vmatprep.subr.bf16.mxu0 %v629_v1  ;;  %535 = vmatprep.mubr.msk.bf16.mxu1 %vm630_vm1, %v629_v1  ;;  %s696_s29 = sadd.s32 %s512_s27, %s746_s15  ;;  %s221_s6 = sadd.s32 %s510_s26, %s509_s28  ;;  %v353_v6 = vsel %vm242_vm0, %v344_v5, 0  ;;  %vm404_vm4 = vcmask 122880  }
  0x12   : > { %534 = vmatpush3.bf16.msra.mxu1 %v302_v4  ;;  %s511_s7 = sshll.u32 %s221_s6, 2  ;;  %s513_s11 = sshll.u32 %s696_s29, 1 }
  0x13   : > { %s223_s10 = scalar_lea.vmem %s728_s0, %s511_s7  ;;  %s231_s14 = scalar_lea.vmem %s732_s4, %s513_s11 }
  0x14   : > { %v233_v7 = vld [vmem:[%s223_s10] sm:$0xf]  ;;  %v234_v8 = vld [vmem:[%s223_s10 + $0x4] sm:$0x1] }
  0x15   : > { %v235_v9 = vld [vmem:[%s223_s10] sm:$0xe]  ;;  %530 = vmatmul.mubr.msk.bf16.vlgmr.msra.gmra.mxu0 %vm238_vm2, %v233_v7  ;;  %v515_v10 = vcombine.low %v233_v7, %v234_v8 }
  0x16   : > { %v517_v11 = vcombine.low %v235_v9, %v234_v8  ;;  %540 = vmatpush3.bf16.msra.mxu0 %v353_v6  ;;  %541 = vmatprep.mubr.msk.bf16.mxu0 %vm630_vm1, %v629_v1 }
  0x17   : > { %v292_v12 = vshrl.u32 %v515_v10, 16  ;;  %v294_v13 = vshll.u32 %v515_v10, 16 }
  0x18   : > { %v348_v15 = vrot.slane %v517_v11, 1 }
  0x19   : > { %v296_v14 = vrot.slane %v294_v13, 1 }
  0x1b   : > { %v297_v16 = vor.u32 %v296_v14, %v292_v12 }
  0x1d   : > { %536 = vmatmul.mubr.msk.bf16.vlgmr.msra.gmra.mxu1 %vm238_vm2, %v297_v16  ;;  %542 = vmatmul.mubr.msk.bf16.vlgmr.msra.gmra.mxu0 %vm238_vm2, %v348_v15 }
  0xd5   : > { %v280_v17 = vpop.f32.mrf.mxu0 }
  0xd7   : > { %v531_v18 = vpop.f32.mrf.mxu0 }
  0xd9   : > { %v283_v19 = vpop.f32.mrf.mxu0 }
  0xdb   : > { %v532_v20 = vpop.f32.mrf.mxu0 }
  0xdd   : > { %v338_v21 = vpop.f32.mrf.mxu1  ;;  %v389_v22 = vpop.f32.mrf.mxu0 }
  0xde   : > { %v339_v23 = vadd.f32 %v338_v21, %v280_v17 }
  0xdf   : > { %v537_v24 = vpop.f32.mrf.mxu1  ;;  %v543_v25 = vpop.f32.mrf.mxu0 }
  0xe0   : > { %v395_v26 = vadd.f32 %v389_v22, %v339_v23 }
  0xe1   : > { %v341_v27 = vpop.f32.mrf.mxu1  ;;  %v392_v28 = vpop.f32.mrf.mxu0 }
  0xe2   : > { %v397_v29 = vsel %vm396_vm3, %v395_v26, 0.0  ;;  %v406_v30 = vmul.f32 %v395_v26, %v395_v26 }
  0xe3   : > { %v398_v31 = vrot.slane %v397_v29, 4  ;;  %v538_v32 = vpop.f32.mrf.mxu1  ;;  %v544_v33 = vpop.f32.mrf.mxu0 }
  0xe4   : > { %v407_v34 = vsel %vm396_vm3, %v406_v30, 0.0 }
  0xe5   : > { %v399_v35 = vadd.f32 %v398_v31, %v397_v29  ;;  %v408_v36 = vrot.slane %v407_v34, 4 }
  0xe7   : > { %v400_v37 = vrot.slane %v399_v35, 2  ;;  %v409_v38 = vadd.f32 %v408_v36, %v407_v34 }
  0xe9   : > { %v401_v39 = vadd.f32 %v400_v37, %v399_v35  ;;  %v410_v40 = vrot.slane %v409_v38, 2 }
  0xeb   : > { %v402_v41 = vrot.slane %v401_v39, 1  ;;  %v411_v42 = vadd.f32 %v410_v40, %v409_v38 }
  0xed   : > { %v403_v43 = vadd.f32 %v402_v41, %v401_v39  ;;  %v412_v44 = vrot.slane %v411_v42, 1 }
  0xef   : > { %405 = vst.msk [vmem:[%s231_s14] sm:$0x1] %vm404_vm4, %v403_v43  ;;  %v413_v45 = vadd.f32 %v412_v44, %v411_v42 }
  0xf1   : > { %414 = vst.msk [vmem:[%s231_s14 + $0x1] sm:$0x1] %vm404_vm4, %v413_v45 }
  0xf2 PF: > { %s14_s19 = sadd.s32 1, %s627_s19   ;;  %s733_s15 = smov %s619_s17 }
  0xf3   : > { %p11_p7 = scmp.ge.s32.totalorder %s14_s19, 6   ;;  %s734_s16 = smov %s623_s18 }
  0xf4   : > { %s735_s17 = smov %s738_s20  ;;  %s736_s18 = smov %s742_s21 }
  0xf5   :  { %13 = sbr.rel (!%p11_p7) target bundleno = 3 (0x3), region = 66 }

// kernel: upsample4.3
= control target key start
LH: loop header
LB: loop body
LE: loop exit
PB: predicated region body
PF: predicated region fallthrough
CT: control target
= control target key end

     0   :  { %s722_s21 = smov 0   ;;  %s724_s22 = smov 0   ;;  %s800_s0 = inlined_call_operand.vmem [shape: bf16[2,2,10,4], index: 0, kind: input, shape index: {}]   ;;  %s801_s1 = inlined_call_operand.vmem [shape: bf16[4,16], index: 1, kind: input, shape index: {}]   ;;  %s802_s2 = inlined_call_operand.vmem [shape: bf16[4,16], index: 2, kind: input, shape index: {}]   ;;  %s803_s3 = inlined_call_operand.vmem [shape: bf16[4,16], index: 3, kind: input, shape index: {}]   ;;  %s804_s4 = inlined_call_operand.vmem [shape: f32[1,16], index: 4, kind: input, shape index: {}]   ;;  %s805_s5 = inlined_call_operand.vmem [shape: f32[1,16], index: 5, kind: input, shape index: {}]   ;;  %s806_s6 = inlined_call_operand.vmem [shape: f32[2,16,16], index: 6, kind: output, shape index: {}]  }
   0x1   :  { %s726_s23 = smov 0   ;;  %s728_s24 = smov 0  }
   0x2   :  { %s730_s25 = smov 0  }
   0x3 LB: > { %s25_s26 = sadd.s32 1, %s675_s23  ;;  %s28_s27 = sadd.s32 1, %s679_s24  ;;  %s683_s25 = sphi %s730_s25, %s16_s25   ;;  %s679_s24 = sphi %s728_s24, %s810_s24   ;;  %s675_s23 = sphi %s726_s23, %s809_s23   ;;  %s671_s22 = sphi %s724_s22, %s808_s22   ;;  %s667_s21 = sphi %s722_s21, %s807_s21  }
   0x4   : > { %p26_p0 = scmp.ge.s32.totalorder %s25_s26, 2  ;;  %p562_p1 = scmp.ge.s32.totalorder %s683_s25, 1 }
   0x5   : > { %p232_p2 = scmp.lt.s32.totalorder %s683_s25, 5 }
   0x6   : > { %s812_s26 = smov (%p26_p0, %s25_s26), 0  ;;  %s814_s27 = smov (!%p26_p0, %s28_s27), %s679_s24 }
   0x7   : > { %p233_p3 = pnand %p562_p1, %p232_p2  ;;  %p30_p4 = scmp.ge.s32.totalorder %s814_s27, 2 }
   0x8   : > { %p269_p5 = scmp.lt.s32.totalorder (!%p233_p3), %s671_s22, 1  ;;  %p271_p6 = scmp.lt.s32.totalorder (!%p233_p3), %s667_s21, 1 }
   0x9   : > { %s816_s27 = smov (%p30_p4, %s814_s27), 0  ;;  %236 = sbr.rel (%p233_p3) target bundleno = 233 (0xe9), region = 44 }
   0xe   : > { %v291_v0 = vld [vmem:[%s802_s2] sm:$0x3]  ;;  %vm296_vm0 = vcmask 1041408   ;;  %v685_v1 = vmov 0.0   ;;  %vm686_vm1 = vmmov 0   ;;  %s818_s22 = smov (!%p269_p5, %s671_s22), 1 }
   0xf   : > { %583 = vmatprep.subr.bf16.mxu0 %v685_v1  ;;  %v298_v2 = vsel %vm296_vm0, %v291_v0, 0  ;;  %585 = vmatprep.mubr.msk.bf16.mxu0 %vm686_vm1, %v685_v1  ;;  %v290_v3 = vld [vmem:[%s801_s1] sm:$0x3]  ;;  %s820_s21 = smov (!%p271_p6, %s667_s21), 1  ;;  %s564_s8 = sshll.u32 %s818_s22, 2  ;;  %vm292_vm2 = vcmask 31744  }
  0x10   : > { %584 = vmatpush3.bf16.msra.mxu0 %v298_v2  ;;  %589 = vmatprep.subr.bf16.mxu1 %v685_v1  ;;  %v356_v4 = vsel %vm296_vm0, %v290_v3, 0  ;;  %s566_s9 = sshll.u32 %s818_s22, 1  ;;  %s563_s10 = sshll.u32 %s820_s21, 1  ;;  %v398_v5 = vld [vmem:[%s803_s3] sm:$0x3]  ;;  %vm467_vm3 = vcmask 130048  }
  0x11   : > { %595 = vmatprep.subr.bf16.mxu0 %v685_v1  ;;  %591 = vmatprep.mubr.msk.bf16.mxu1 %vm686_vm1, %v685_v1  ;;  %s762_s11 = sadd.s32 %s566_s9, %s820_s21  ;;  %s275_s14 = sadd.s32 %s564_s8, %s563_s10  ;;  %v407_v6 = vsel %vm296_vm0, %v398_v5, 0  ;;  %v573_v24 = vld [vmem:[%s804_s4] ss:$0 sm:$0xff] }
  0x12   : > { %590 = vmatpush3.bf16.msra.mxu1 %v356_v4  ;;  %s565_s15 = sshll.u32 %s275_s14, 2  ;;  %v574_v28 = vld [vmem:[%s805_s5] ss:$0 sm:$0xff]  ;;  %s567_s28 = sshll.u32 %s762_s11, 3 }
  0x13   : > { %s277_s18 = scalar_lea.vmem %s800_s0, %s565_s15  ;;  %s285_s7 = scalar_lea.vmem %s806_s6, %s567_s28 }
  0x14   : > { %v287_v7 = vld [vmem:[%s277_s18] sm:$0xf]  ;;  %v288_v8 = vld [vmem:[%s277_s18 + $0x4] sm:$0x1] }
  0x15   : > { %v289_v9 = vld [vmem:[%s277_s18] sm:$0xe]  ;;  %586 = vmatmul.mubr.msk.bf16.vlgmr.msra.gmra.mxu0 %vm292_vm2, %v287_v7  ;;  %v569_v10 = vcombine.low %v287_v7, %v288_v8 }
  0x16   : > { %v571_v11 = vcombine.low %v289_v9, %v288_v8  ;;  %596 = vmatpush3.bf16.msra.mxu0 %v407_v6  ;;  %597 = vmatprep.mubr.msk.bf16.mxu0 %vm686_vm1, %v685_v1 }
  0x17   : > { %v346_v12 = vshrl.u32 %v569_v10, 16  ;;  %v348_v13 = vshll.u32 %v569_v10, 16 }
  0x18   : > { %v402_v15 = vrot.slane %v571_v11, 1 }
  0x19   : > { %v350_v14 = vrot.slane %v348_v13, 1 }
  0x1b   : > { %v351_v16 = vor.u32 %v350_v14, %v346_v12 }
  0x1d   : > { %592 = vmatmul.mubr.msk.bf16.vlgmr.msra.gmra.mxu1 %vm292_vm2, %v351_v16  ;;  %598 = vmatmul.mubr.msk.bf16.vlgmr.msra.gmra.mxu0 %vm292_vm2, %v402_v15 }
  0xd5   : > { %v334_v17 = vpop.f32.mrf.mxu0 }
  0xd7   : > { %v587_v18 = vpop.f32.mrf.mxu0 }
  0xd9   : > { %v337_v19 = vpop.f32.mrf.mxu0 }
  0xdb   : > { %v588_v20 = vpop.f32.mrf.mxu0 }
  0xdd   : > { %v392_v21 = vpop.f32.mrf.mxu1  ;;  %v443_v22 = vpop.f32.mrf.mxu0 }
  0xde   : > { %v393_v23 = vadd.f32 %v392_v21, %v334_v17 }
  0xdf   : > { %v593_v25 = vpop.f32.mrf.mxu1  ;;  %v599_v26 = vpop.f32.mrf.mxu0 }
  0xe0   : > { %v449_v27 = vadd.f32 %v443_v22, %v393_v23 }
  0xe1   : > { %v395_v29 = vpop.f32.mrf.mxu1  ;;  %v446_v30 = vpop.f32.mrf.mxu0 }
  0xe2   : > { %v457_v31 = vmul.f32 %v573_v24, %v449_v27 }
  0xe3   : > { %v594_v32 = vpop.f32.mrf.mxu1  ;;  %v600_v33 = vpop.f32.mrf.mxu0 }
  0xe4   : > { %v465_v34 = vadd.f32 %v574_v28, %v457_v31 }
  0xe6   : > { %v466_v35 = vmax.f32 %v465_v34, 0.0 }
  0xe8   : > { %468 = vst.msk [vmem:[%s285_s7] sm:$0xff] %vm467_vm3, %v466_v35 }
  0xe9 PF: > { %s16_s25 = sadd.s32 1, %s683_s25   ;;  %s807_s21 = smov %s675_s23 }
  0xea   : > { %p13_p7 = scmp.ge.s32.totalorder %s16_s25, 6   ;;  %s808_s22 = smov %s679_s24 }
  0xeb   : > { %s809_s23 = smov %s812_s26  ;;  %s810_s24 = smov %s816_s27 }
  0xec   :  { %15 = sbr.rel (!%p13_p7) target bundleno = 3 (0x3), region = 74 }

</bundles_post_ra>
